<compile_context>
chip_gen: v5e
topology: v5e:2x2
jax: 0.10.0
libtpu: 0.0.40
codegen_flags: <defaults>
</compile_context>

<pallas_src>
import jax
import jax.numpy as jnp
from jax.experimental import pallas as pl
from jax.experimental.pallas import tpu as pltpu

LANE = 128


def _round_up(n, m):
    return ((n + m - 1) // m) * m


def make_actor_kernel(low, high):
    """Actor forward; weights lane-padded, output block is the narrow (TB, action_size) slab."""
    # tanh already lands in [-1, 1]; skip the clip when the bounds are vacuous.
    apply_clip = not (low <= -1.0 and high >= 1.0)

    def actor_kernel(x_ref, w1_ref, b1_ref, w2_ref, b2_ref, w3_ref, b3_ref, o_ref):
        x = x_ref[...].astype(jnp.bfloat16)                                 # [TB, S]
        h1 = jnp.dot(x, w1_ref[...], preferred_element_type=jnp.float32)   # [TB, 128]
        h1 = jnp.maximum(h1 + b1_ref[...], 0.0)                            # ReLU (f32)
        h2 = jnp.dot(h1.astype(jnp.bfloat16), w2_ref[...],
                     preferred_element_type=jnp.float32)                   # [TB, 128]
        h2 = jnp.maximum(h2 + b2_ref[...], 0.0)                            # ReLU (f32)
        h3 = jnp.dot(h2.astype(jnp.bfloat16), w3_ref[...],
                     preferred_element_type=jnp.float32)                   # [TB, 128]
        y = jnp.tanh(h3 + b3_ref[...])
        if apply_clip:
            y = jnp.clip(y, low, high)
        # Store only the real action columns (static lane slice from 0) - no padded writeback.
        o_ref[...] = y[:, : o_ref.shape[1]].astype(o_ref.dtype)

    return actor_kernel


def _pick_batch_tile(B, batch_tile):
    """Tile choice: multiple of 8, <= batch_tile, and >= 2 tiles whenever B > 8 so the
    'parallel' batch axis actually shards across v7x's two TensorCores."""
    if B <= 8:
        return B
    half = _round_up((B + 1) // 2, 8)       # at most ~half the batch -> grid of at least 2
    return max(8, min(batch_tile, half))


def actor_forward(x, params, action_size, low=-1.0, high=1.0, batch_tile=2048):
    """x: [B, state_size] f32. params: dict of lane-padded (w1,b1,w2,b2,w3,b3).
    Returns [B, action_size] f32."""
    w1, b1 = params["w1"], params["b1"]
    w2, b2 = params["w2"], params["b2"]
    w3, b3 = params["w3"], params["b3"]

    B, S = x.shape

    TB = _pick_batch_tile(B, batch_tile)
    grid = (pl.cdiv(B, TB),)

    kernel = make_actor_kernel(low, high)
    # Weights/biases: constant block index -> resident in VMEM across batch iterations.
    resident = lambda a: pl.BlockSpec(a.shape, lambda i: (0,) * a.ndim)

    out = pl.pallas_call(
        kernel,
        # Narrow, real-width output: no padded columns hit HBM, no wrapper slice needed.
        out_shape=jax.ShapeDtypeStruct((B, action_size), jnp.float32),
        grid=grid,
        in_specs=[
            pl.BlockSpec((TB, S), lambda i: (i, 0)),  # x tiled on batch
            resident(w1), resident(b1),
            resident(w2), resident(b2),
            resident(w3), resident(b3),
        ],
        out_specs=pl.BlockSpec((TB, action_size), lambda i: (i, 0)),
        compiler_params=pltpu.CompilerParams(
            dimension_semantics=("parallel",),  # shards batch tiles across TCs on v7x
            # Footprint is tiny (2048-row tile: ~64 KB x + ~32 KB out, ~35 KB weights), well inside
            # even v5e's 16 MiB scoped-VMEM default; no explicit vmem_limit_bytes needed.
        ),
    )(x, w1, b1, w2, b2, w3, b3)

    return out


def init_actor_params(key, state_size, action_size, hidden=100):
    """torch.nn.Linear-style init (uniform +-1/sqrt(fan_in)); weights stored as [in, out],
    zero-padded on the hidden/out axes to multiples of 128 lanes, weights cast to bf16.
    NOTE: padded columns/rows MUST stay exactly zero (re-zero if loading a checkpoint)."""
    H_pad = _round_up(hidden, LANE)
    A_pad = _round_up(action_size, LANE)
    ks = jax.random.split(key, 6)

    def linear(kw, kb, fan_in, fan_out, out_pad, in_pad=None):
        bound = 1.0 / float(fan_in) ** 0.5
        w = jax.random.uniform(kw, (fan_in, fan_out), jnp.float32, -bound, bound)
        b = jax.random.uniform(kb, (1, fan_out), jnp.float32, -bound, bound)
        w = jnp.pad(w, ((0, 0), (0, out_pad - fan_out)))
        b = jnp.pad(b, ((0, 0), (0, out_pad - fan_out)))
        if in_pad is not None:
            w = jnp.pad(w, ((0, in_pad - fan_in), (0, 0)))
        return w.astype(jnp.bfloat16), b  # biases stay f32

    w1, b1 = linear(ks[0], ks[1], state_size, hidden, H_pad)
    w2, b2 = linear(ks[2], ks[3], hidden, hidden, H_pad, in_pad=H_pad)
    w3, b3 = linear(ks[4], ks[5], hidden, action_size, A_pad, in_pad=H_pad)
    return {"w1": w1, "b1": b1, "w2": w2, "b2": b2, "w3": w3, "b3": b3}


if __name__ == "__main__":
    key = jax.random.PRNGKey(0)
    k_x, k_p = jax.random.split(key)

    batch = 8
    state_size = 8
    action_size = 4
    low, high = -1.0, 1.0

    x = jax.random.normal(k_x, (batch, state_size), dtype=jnp.float32)
    params = init_actor_params(k_p, state_size, action_size)

    out = actor_forward(x, params, action_size, low=low, high=high)
    out = jax.block_until_ready(out)

    # Pure-JAX reference with identical math (bf16 matmul inputs, f32 accumulate, lane padding)
    # so the Pallas kernel can be checked tightly.
    def ref(x, p):
        xb = x.astype(jnp.bfloat16)
        h1 = jnp.maximum(
            jnp.dot(xb, p["w1"], preferred_element_type=jnp.float32) + p["b1"], 0.0)
        h2 = jnp.maximum(
            jnp.dot(h1.astype(jnp.bfloat16), p["w2"],
                    preferred_element_type=jnp.float32) + p["b2"], 0.0)
        y = jnp.tanh(
            jnp.dot(h2.astype(jnp.bfloat16), p["w3"],
                    preferred_element_type=jnp.float32) + p["b3"])
        return jnp.clip(y, low, high)[:, :action_size]

    expected = ref(x, params)
    assert out.shape == (batch, action_size)
    assert jnp.allclose(out, expected, atol=1e-4, rtol=1e-4), float(
        jnp.max(jnp.abs(out - expected)))

    print("KERNEL_OK")
</pallas_src>

<mosaic_0001>
module attributes {stable_mosaic.version = 11 : i64} {
  func.func @actor_kernel(%arg0: i32, %arg1: memref<8x8xf32, #tpu.memory_space<vmem>>, %arg2: memref<8x128xbf16, #tpu.memory_space<vmem>>, %arg3: memref<1x128xf32, #tpu.memory_space<vmem>>, %arg4: memref<128x128xbf16, #tpu.memory_space<vmem>>, %arg5: memref<1x128xf32, #tpu.memory_space<vmem>>, %arg6: memref<128x128xbf16, #tpu.memory_space<vmem>>, %arg7: memref<1x128xf32, #tpu.memory_space<vmem>>, %arg8: memref<8x4xf32, #tpu.memory_space<vmem>>) attributes {dimension_semantics = [#tpu.dimension_semantics<parallel>], iteration_bounds = array<i64: 1>, scalar_prefetch = 0 : i64, scratch_operands = 0 : i64, tpu.core_type = #tpu.core_type<tc>, window_params = [{transform_indices = @transform_0, window_bounds = array<i64: 8, 8>}, {pipeline_mode = #tpu.pipeline_mode<synchronous>, transform_indices = @transform_1, window_bounds = array<i64: 8, 128>}, {pipeline_mode = #tpu.pipeline_mode<synchronous>, transform_indices = @transform_2, window_bounds = array<i64: 1, 128>}, {pipeline_mode = #tpu.pipeline_mode<synchronous>, transform_indices = @transform_3, window_bounds = array<i64: 128, 128>}, {pipeline_mode = #tpu.pipeline_mode<synchronous>, transform_indices = @transform_4, window_bounds = array<i64: 1, 128>}, {pipeline_mode = #tpu.pipeline_mode<synchronous>, transform_indices = @transform_5, window_bounds = array<i64: 128, 128>}, {pipeline_mode = #tpu.pipeline_mode<synchronous>, transform_indices = @transform_6, window_bounds = array<i64: 1, 128>}, {transform_indices = @transform_7, window_bounds = array<i64: 8, 4>}]} {
    %c0 = arith.constant 0 : index
    %c0_0 = arith.constant 0 : index
    %0 = vector.load %arg1[%c0, %c0_0] : memref<8x8xf32, #tpu.memory_space<vmem>>, vector<8x8xf32>
    %1 = arith.truncf %0 : vector<8x8xf32> to vector<8x8xbf16>
    %c0_1 = arith.constant 0 : index
    %c0_2 = arith.constant 0 : index
    %2 = vector.load %arg2[%c0_1, %c0_2] : memref<8x128xbf16, #tpu.memory_space<vmem>>, vector<8x128xbf16>
    %cst = arith.constant dense<0.000000e+00> : vector<8x128xf32>
    %3 = tpu.matmul %1, %2, %cst {dimension_numbers = #tpu.dot_dimension_numbers<[1], [0], [0], [1], [0, 0, 1, 1], [], []>} : vector<8x8xbf16>, vector<8x128xbf16>, vector<8x128xf32> -> vector<8x128xf32>
    %c0_3 = arith.constant 0 : index
    %c0_4 = arith.constant 0 : index
    %4 = vector.load %arg3[%c0_3, %c0_4] : memref<1x128xf32, #tpu.memory_space<vmem>>, vector<1x128xf32>
    %5 = vector.broadcast %4 : vector<1x128xf32> to vector<8x128xf32>
    %6 = arith.addf %3, %5 : vector<8x128xf32>
    %cst_5 = arith.constant 0.000000e+00 : f32
    %7 = vector.broadcast %cst_5 : f32 to vector<8x128xf32>
    %8 = arith.maximumf %6, %7 : vector<8x128xf32>
    %9 = arith.truncf %8 : vector<8x128xf32> to vector<8x128xbf16>
    %c0_6 = arith.constant 0 : index
    %c0_7 = arith.constant 0 : index
    %10 = vector.load %arg4[%c0_6, %c0_7] : memref<128x128xbf16, #tpu.memory_space<vmem>>, vector<128x128xbf16>
    %cst_8 = arith.constant dense<0.000000e+00> : vector<8x128xf32>
    %11 = tpu.matmul %9, %10, %cst_8 {dimension_numbers = #tpu.dot_dimension_numbers<[1], [0], [0], [1], [0, 0, 1, 1], [], []>} : vector<8x128xbf16>, vector<128x128xbf16>, vector<8x128xf32> -> vector<8x128xf32>
    %c0_9 = arith.constant 0 : index
    %c0_10 = arith.constant 0 : index
    %12 = vector.load %arg5[%c0_9, %c0_10] : memref<1x128xf32, #tpu.memory_space<vmem>>, vector<1x128xf32>
    %13 = vector.broadcast %12 : vector<1x128xf32> to vector<8x128xf32>
    %14 = arith.addf %11, %13 : vector<8x128xf32>
    %cst_11 = arith.constant 0.000000e+00 : f32
    %15 = vector.broadcast %cst_11 : f32 to vector<8x128xf32>
    %16 = arith.maximumf %14, %15 : vector<8x128xf32>
    %17 = arith.truncf %16 : vector<8x128xf32> to vector<8x128xbf16>
    %c0_12 = arith.constant 0 : index
    %c0_13 = arith.constant 0 : index
    %18 = vector.load %arg6[%c0_12, %c0_13] : memref<128x128xbf16, #tpu.memory_space<vmem>>, vector<128x128xbf16>
    %cst_14 = arith.constant dense<0.000000e+00> : vector<8x128xf32>
    %19 = tpu.matmul %17, %18, %cst_14 {dimension_numbers = #tpu.dot_dimension_numbers<[1], [0], [0], [1], [0, 0, 1, 1], [], []>} : vector<8x128xbf16>, vector<128x128xbf16>, vector<8x128xf32> -> vector<8x128xf32>
    %c0_15 = arith.constant 0 : index
    %c0_16 = arith.constant 0 : index
    %20 = vector.load %arg7[%c0_15, %c0_16] : memref<1x128xf32, #tpu.memory_space<vmem>>, vector<1x128xf32>
    %21 = vector.broadcast %20 : vector<1x128xf32> to vector<8x128xf32>
    %22 = arith.addf %19, %21 : vector<8x128xf32>
    %23 = math.tanh %22 : vector<8x128xf32>
    %24 = vector.extract_strided_slice %23 {offsets = [0, 0], sizes = [8, 4], strides = [1, 1]} : vector<8x128xf32> to vector<8x4xf32>
    %c0_17 = arith.constant 0 : index
    %c0_18 = arith.constant 0 : index
    %25 = vector.load %arg8[%c0_17, %c0_18] : memref<8x4xf32, #tpu.memory_space<vmem>>, vector<8x4xf32>
    tpu.vector_store %arg8[%c0_17, %c0_18], %24 {strides = array<i32>} : memref<8x4xf32, #tpu.memory_space<vmem>>, vector<8x4xf32>,
    return
  }
  func.func @transform_0(%arg0: i32) -> (i32, i32) {
    %c0_i32 = arith.constant 0 : i32
    %c0_i32_0 = arith.constant 0 : i32
    return %arg0, %c0_i32 : i32, i32
  }
  func.func @transform_1(%arg0: i32) -> (i32, i32) {
    %c0_i32 = arith.constant 0 : i32
    %c0_i32_0 = arith.constant 0 : i32
    %c0_i32_1 = arith.constant 0 : i32
    return %c0_i32, %c0_i32_0 : i32, i32
  }
  func.func @transform_2(%arg0: i32) -> (i32, i32) {
    %c0_i32 = arith.constant 0 : i32
    %c0_i32_0 = arith.constant 0 : i32
    %c0_i32_1 = arith.constant 0 : i32
    return %c0_i32, %c0_i32_0 : i32, i32
  }
  func.func @transform_3(%arg0: i32) -> (i32, i32) {
    %c0_i32 = arith.constant 0 : i32
    %c0_i32_0 = arith.constant 0 : i32
    %c0_i32_1 = arith.constant 0 : i32
    return %c0_i32, %c0_i32_0 : i32, i32
  }
  func.func @transform_4(%arg0: i32) -> (i32, i32) {
    %c0_i32 = arith.constant 0 : i32
    %c0_i32_0 = arith.constant 0 : i32
    %c0_i32_1 = arith.constant 0 : i32
    return %c0_i32, %c0_i32_0 : i32, i32
  }
  func.func @transform_5(%arg0: i32) -> (i32, i32) {
    %c0_i32 = arith.constant 0 : i32
    %c0_i32_0 = arith.constant 0 : i32
    %c0_i32_1 = arith.constant 0 : i32
    return %c0_i32, %c0_i32_0 : i32, i32
  }
  func.func @transform_6(%arg0: i32) -> (i32, i32) {
    %c0_i32 = arith.constant 0 : i32
    %c0_i32_0 = arith.constant 0 : i32
    %c0_i32_1 = arith.constant 0 : i32
    return %c0_i32, %c0_i32_0 : i32, i32
  }
  func.func @transform_7(%arg0: i32) -> (i32, i32) {
    %c0_i32 = arith.constant 0 : i32
    %c0_i32_0 = arith.constant 0 : i32
    return %arg0, %c0_i32 : i32, i32
  }
}

</mosaic_0001>

<bundles_post_ra>
// kernel: tpu_custom_call.1
= control target key start
LH: loop header
LB: loop body
LE: loop exit
PB: predicated region body
PF: predicated region fallthrough
CT: control target
= control target key end

     0   :  { %12 = vsyncpa [#allocation3], 0  ;;  %s554_s0 = inlined_call_operand.hbm [shape: f32[8,8], index: 0, kind: input, shape index: {}]   ;;  %s555_s1 = inlined_call_operand.hbm [shape: bf16[8,128], index: 1, kind: input, shape index: {}]   ;;  %s556_s2 = inlined_call_operand.vmem [shape: f32[1,128], index: 2, kind: input, shape index: {}]   ;;  %s557_s3 = inlined_call_operand.hbm [shape: bf16[128,128], index: 3, kind: input, shape index: {}]   ;;  %s558_s4 = inlined_call_operand.vmem [shape: f32[1,128], index: 4, kind: input, shape index: {}]   ;;  %s559_s5 = inlined_call_operand.hbm [shape: bf16[128,128], index: 5, kind: input, shape index: {}]   ;;  %s560_s6 = inlined_call_operand.vmem [shape: f32[1,128], index: 6, kind: input, shape index: {}]   ;;  %s561_s7 = inlined_call_operand.vmem [shape: f32[8,4], index: 7, kind: output, shape index: {}]  }
   0x1   :  { %13 = vsyncpa [#allocation5], 0  ;;  %s31_s26 = sshll.u32 %s555_s1, 4  ;;  %s32_s26 = int_to_ptr.hbm [resolvable:$true] %s31_s26 }
   0x2   :  { %14 = vsyncpa [#allocation8], 0  ;;  %s484_s27 = smov [#allocation4]   ;;  %s20_s8 = sshll.u32 %s554_s0, 4  ;;  %s21_s8 = int_to_ptr.hbm [resolvable:$true] %s20_s8 }
   0x3   :  { %s33_s28 = sshll.u32 %s484_s27, 4  ;;  %s485_s9 = smov [#allocation2]   ;;  %s34_s28 = int_to_ptr.vmem [resolvable:$true] %s33_s28 }
   0x4   :  { %36 = dma.hbm_to_vmem [thread:$0]  %s32_s26, 64, %s34_s28, [#allocation5]  }
   0x5   :  { %s22_s10 = sshll.u32 %s485_s9, 4  ;;  %s43_s13 = sshll.u32 %s557_s3, 4  ;;  %s23_s10 = int_to_ptr.vmem [resolvable:$true] %s22_s10  ;;  %s44_s13 = int_to_ptr.hbm [resolvable:$true] %s43_s13 }
   0x6   :  { %25 = dma.hbm_to_vmem [thread:$0]  %s21_s8, 128, %s23_s10, [#allocation3]  }
   0x7   :  { %s486_s1 = smov [#allocation6]   ;;  %s58_s17 = sshll.u32 %s559_s5, 4  ;;  %s59_s17 = int_to_ptr.hbm [resolvable:$true] %s58_s17 }
   0x8   :  { %s45_s14 = sshll.u32 %s486_s1, 4  ;;  %s487_s18 = smov 64   ;;  %s46_s14 = int_to_ptr.vmem [resolvable:$true] %s45_s14 }
   0x9   :  { %s488_s0 = smov 4   ;;  %s489_s19 = smov [#allocation7]  }
   0xa   :  { %51 = dma.hbm_to_vmem [thread:$0]  %s44_s13, 1024, %s46_s14, [#allocation5], %s487_s18, %s487_s18, %s488_s0  }
   0xb   :  { %s60_s20 = sshll.u32 %s489_s19, 4  ;;  %s61_s20 = int_to_ptr.vmem [resolvable:$true] %s60_s20 }
   0xc   :  { %66 = dma.hbm_to_vmem [thread:$0]  %s59_s17, 1024, %s61_s20, [#allocation8], %s487_s18, %s487_s18, %s488_s0  }
   0xd   :  { %478 = dma.done.wait [#allocation3], 128  }
   0xe   :  { %479 = vsyncadd [#allocation3], 4294967168 }
   0xf   :  { %480 = dma.done.wait [#allocation5], 1088  }
  0x10   :  { %481 = vsyncadd [#allocation5], 4294966208 }
  0x11   :  { %482 = dma.done.wait [#allocation8], 1024  }
  0x12   :  { %483 = vsyncadd [#allocation8], 4294966272  ;;  %vm97_vm0 = vcmask 1043456   ;;  %v88_v0 = vld [vmem:[#allocation4] sm:$0xf]  ;;  %v86_v1 = vld [vmem:[#allocation2] sm:$0xff] }
  0x13   :  { %v362_v2 = vld [vmem:[#allocation6 + $0x38] sm:$0xff]  ;;  %v99_v3 = vsel %vm97_vm0, %v88_v0, 0  ;;  %v87_v4 = vpack.c.bf16 %v86_v1, %v86_v1  ;;  %vm93_vm1 = vcmask 64512   ;;  %v361_v5 = vld [vmem:[#allocation6 + $0x30] sm:$0xff]  ;;  %v360_v6 = vld [vmem:[#allocation6 + $0x28] sm:$0xff]  ;;  %vm281_vm2 = vcmask 31744  }
  0x14   :  { %108 = vmatpush.bf16.msra.mxu0 %v99_v3  ;;  %184 = vmatpush.bf16.msra.mxu1 %v362_v2  ;;  %v359_v7 = vld [vmem:[#allocation6 + $0x20] sm:$0xff]  ;;  %v358_v8 = vld [vmem:[#allocation6 + $0x18] sm:$0xff]  ;;  %v357_v9 = vld [vmem:[#allocation6 + $0x10] sm:$0xff] }
  0x15   :  { %v356_v10 = vld [vmem:[#allocation6 + $0x8] sm:$0xff]  ;;  %v355_v11 = vld [vmem:[#allocation6] sm:$0xff]  ;;  %v370_v12 = vld [vmem:[#allocation7 + $0x38] sm:$0xff] }
  0x16   :  { %267 = vmatpush.bf16.msra.mxu2 %v370_v12  ;;  %v369_v13 = vld [vmem:[#allocation7 + $0x30] sm:$0xff]  ;;  %v368_v14 = vld [vmem:[#allocation7 + $0x28] sm:$0xff]  ;;  %v367_v15 = vld [vmem:[#allocation7 + $0x20] sm:$0xff] }
  0x17   :  { %290 = vmatmul.msk.bf16.vlgmr.msra.gmra.mxu0 %vm93_vm1, %v87_v4  ;;  %v366_v16 = vld [vmem:[#allocation7 + $0x18] sm:$0xff]  ;;  %v365_v17 = vld [vmem:[#allocation7 + $0x10] sm:$0xff]  ;;  %v364_v24 = vld [vmem:[#allocation7 + $0x8] sm:$0xff] }
  0x18   :  { %185 = vmatpush.bf16.msra.mxu1 %v361_v5  ;;  %v377_v18 = vld [vmem:[%s556_s2] ss:$0 sm:$0xff]  ;;  %v363_v25 = vld [vmem:[#allocation7] sm:$0xff] }
  0x19   :  { %v378_v26 = vld [vmem:[%s558_s4] ss:$0 sm:$0xff] }
  0x1a   :  { %268 = vmatpush.bf16.msra.mxu2 %v369_v13  ;;  %v379_v32 = vld [vmem:[%s560_s6] ss:$0 sm:$0xff] }
  0x1c   :  { %186 = vmatpush.bf16.msra.mxu1 %v360_v6 }
  0x1e   :  { %269 = vmatpush.bf16.msra.mxu2 %v368_v14 }
  0x20   :  { %187 = vmatpush.bf16.msra.mxu1 %v359_v7 }
  0x22   :  { %270 = vmatpush.bf16.msra.mxu2 %v367_v15 }
  0x24   :  { %188 = vmatpush.bf16.msra.mxu1 %v358_v8 }
  0x26   :  { %271 = vmatpush.bf16.msra.mxu2 %v366_v16 }
  0x28   :  { %189 = vmatpush.bf16.msra.mxu1 %v357_v9 }
  0x2a   :  { %272 = vmatpush.bf16.msra.mxu2 %v365_v17 }
  0x2c   :  { %190 = vmatpush.bf16.msra.mxu1 %v356_v10 }
  0x2e   :  { %273 = vmatpush.bf16.msra.mxu2 %v364_v24 }
  0x30   :  { %191 = vmatpush.bf16.msra.mxu1 %v355_v11 }
  0x32   :  { %274 = vmatpush.bf16.msra.mxu2 %v363_v25 }
  0x94   :  { %v110_v19 = vpop.f32.mrf.mxu0 }
  0x95   :  { %v111_v20 = vadd.f32 %v377_v18, %v110_v19 }
  0x97   :  { %v114_v21 = vmax.f32 %v111_v20, 0.0 }
  0x99   :  { %v115_v22 = vpack.c.bf16 %v114_v21, %v114_v21 }
  0x9b   :  { %192 = vmatmul.bf16.vlgmr.msra.gmra.mxu1 %v115_v22 }
  0x9c   :  { %v112_v23 = vpop.f32.mrf.mxu0 }
 0x118   :  { %v193_v27 = vpop.f32.mrf.mxu1 }
 0x119   :  { %v194_v28 = vadd.f32 %v378_v26, %v193_v27 }
 0x11b   :  { %v197_v29 = vmax.f32 %v194_v28, 0.0 }
 0x11d   :  { %v198_v30 = vpack.c.bf16 %v197_v29, %v197_v29 }
 0x11f   :  { %275 = vmatmul.bf16.vlgmr.msra.gmra.mxu2 %v198_v30 }
 0x120   :  { %v195_v31 = vpop.f32.mrf.mxu1 }
 0x1a2   :  { %v276_v33 = vpop.f32.mrf.mxu2 }
 0x1a3   :  { %v277_v34 = vadd.f32 %v379_v32, %v276_v33 }
 0x1a5   :  { %380 = vtanh.f32 %v277_v34 }
 0x1aa   :  { %v278_v35 = vpop.f32.mrf.mxu2 }
 0x1ab   :  { %v381_v36 = vpop.eup %380 }
 0x1ac   :  { %282 = vst.msk [vmem:[%s561_s7] sm:$0xff] %vm281_vm2, %v381_v36 }
 0x1ad   :  { %287 = vsyncpa [#allocation3], 1 }
 0x1ae   :  { %288 = vsyncpa [#allocation5], 1 }
 0x1af   :  { %289 = vsyncpa [#allocation8], 1 }

</bundles_post_ra>
